<compile_context>
chip_gen: v7x
topology: tpu7x:2x2x1
jax: 0.10.0
libtpu: 0.0.40
codegen_flags: <defaults>
</compile_context>

<pallas_src>
import functools

import jax
import jax.numpy as jnp
from jax import lax
from jax.experimental import pallas as pl
from jax.experimental.pallas import tpu as pltpu

BN_EPS = 0.001  # the torch module explicitly sets eps=0.001


def _round_up(v, m):
    return -(-v // m) * m


def _cdiv(a, b):
    return -(-a // b)


def _vmem_capacity_bytes():
    """Physical per-core VMEM; conservative (v7x = 64 MiB) fallback."""
    try:
        cap = int(getattr(pltpu.get_tpu_info(), "vmem_capacity_bytes", 0))
        if cap > 0:
            return cap
    except Exception:
        pass
    return 64 * 1024 * 1024


def _padded_bytes(rows, cols, itemsize, bufs=2):
    """Over-estimate of the VMEM footprint of a (double-buffered) block."""
    return bufs * _round_up(max(rows, 1), 16) * _round_up(max(cols, 1), 128) * itemsize


def prepare_params(w_t, gamma, beta, *, compute_dtype=jnp.float32):
    """One-time parameter prep (hoisted out of the per-call hot path).

    w_t:   (dim_in, dim_out)  Linear weight, pre-transposed.
    gamma: (dim_out,)         BatchNorm weight.
    beta:  (dim_out,)         BatchNorm bias.

    The Linear bias is intentionally omitted (cancelled by the BN mean).
    The feature axis is zero-padded to a 128-lane multiple so every vector
    store in the kernels is lane-dense; padded lanes produce exactly 0 and are
    sliced off by the wrapper.
    """
    dim_in, dim_out = w_t.shape
    f_pad = _round_up(dim_out, 128)
    w_p = jnp.zeros((dim_in, f_pad), compute_dtype).at[:, :dim_out].set(
        w_t.astype(compute_dtype))
    g_p = jnp.ones((1, f_pad), jnp.float32).at[0, :dim_out].set(
        gamma.astype(jnp.float32))
    b_p = jnp.zeros((1, f_pad), jnp.float32).at[0, :dim_out].set(
        beta.astype(jnp.float32))
    return {"w": w_p, "gamma": g_p, "beta": b_p,
            "dim_in": dim_in, "dim_out": dim_out, "f_pad": f_pad,
            "compute_dtype": jnp.dtype(compute_dtype)}


# ---------------------------------------------------------------------------
# Path A: fully fused kernel.  Grid = (feature tiles,), x resident in VMEM.
# ---------------------------------------------------------------------------
def _fused_kernel(x_ref, w_ref, g_ref, b_ref, o_ref):
    # Linear (no bias) for this feature tile; f32 accumulation on the MXU.
    y = jnp.dot(x_ref[...], w_ref[...], preferred_element_type=jnp.float32)
    inv_n = jnp.float32(1.0 / y.shape[0])
    mean = jnp.sum(y, axis=0, keepdims=True) * inv_n
    diff = y - mean
    var = jnp.sum(diff * diff, axis=0, keepdims=True) * inv_n   # biased var
    scale = g_ref[...] * lax.rsqrt(var + BN_EPS)                 # fold gamma
    o_ref[...] = jnp.tanh(diff * scale + b_ref[...]).astype(o_ref.dtype)


# ---------------------------------------------------------------------------
# Path B: batch-tiled two-pass fallback (large N / v7x's 64 MiB VMEM).
# ---------------------------------------------------------------------------
def _matmul_stats_kernel(x_ref, w_ref, y_ref, s_ref, q_ref, *,
                         n_rows, tile_n, mask_tail):
    nb = pl.program_id(1)
    y = jnp.dot(x_ref[...], w_ref[...], preferred_element_type=jnp.float32)

    @pl.when(nb == 0)
    def _():
        s_ref[...] = jnp.zeros_like(s_ref)
        q_ref[...] = jnp.zeros_like(q_ref)

    if mask_tail:
        row = nb * tile_n + lax.broadcasted_iota(jnp.int32, y.shape, 0)
        ym = jnp.where(row < n_rows, y, 0.0)   # padded rows must not pollute
    else:
        ym = y
    s_ref[...] += jnp.sum(ym, axis=0, keepdims=True)
    q_ref[...] += jnp.sum(ym * ym, axis=0, keepdims=True)
    y_ref[...] = y.astype(y_ref.dtype)


def _bn_tanh_kernel(y_ref, scale_ref, shift_ref, o_ref):
    o_ref[...] = jnp.tanh(
        y_ref[...] * scale_ref[...] + shift_ref[...]).astype(o_ref.dtype)


# ---------------------------------------------------------------------------
# Wrapper
# ---------------------------------------------------------------------------
def dnn_forward(x, params, *, force_two_pass=False, max_tile_n=None):
    """Fused Linear (no bias) + BatchNorm1d(train) + tanh.  x: (N, dim_in)."""
    n, dim_in = x.shape
    assert dim_in == params["dim_in"]
    dim_out, f_pad = params["dim_out"], params["f_pad"]
    cdtype = params["compute_dtype"]
    w_p, g_p, b_p = params["w"], params["gamma"], params["beta"]
    itemsize = cdtype.itemsize

    x_c = x if x.dtype == cdtype else x.astype(cdtype)

    capacity = _vmem_capacity_bytes()
    budget = int(0.6 * capacity)            # headroom for compiler scratch
    slack = 4 << 20

    def _limit(need):
        return int(min(max(need + slack, 32 << 20), 0.92 * capacity))

    # ------------------------- Path A -------------------------
    def _need_a(tn):
        return (_padded_bytes(n, dim_in, itemsize)        # x (resident)
                + _padded_bytes(dim_in, tn, itemsize)     # W tile
                + _padded_bytes(n, tn, 4)                 # out tile (f32)
                + 2 * _padded_bytes(1, tn, 4))            # gamma + beta

    tn = None
    if not force_two_pass:
        # Largest 128-multiple feature tile that divides f_pad and fits VMEM.
        for cand in [d * 128 for d in range(f_pad // 128, 0, -1)
                     if f_pad % (d * 128) == 0]:
            if _need_a(cand) <= budget:
                tn = cand
                break

    if tn is not None:
        out_p = pl.pallas_call(
            _fused_kernel,
            out_shape=jax.ShapeDtypeStruct((n, f_pad), jnp.float32),
            grid_spec=pltpu.PrefetchScalarGridSpec(
                num_scalar_prefetch=0,
                grid=(f_pad // tn,),
                in_specs=[
                    pl.BlockSpec((n, dim_in), lambda j: (0, 0)),   # x resident
                    pl.BlockSpec((dim_in, tn), lambda j: (0, j)),  # W^T tile
                    pl.BlockSpec((1, tn), lambda j: (0, j)),       # gamma
                    pl.BlockSpec((1, tn), lambda j: (0, j)),       # beta
                ],
                out_specs=pl.BlockSpec((n, tn), lambda j: (0, j)),
            ),
            compiler_params=pltpu.CompilerParams(
                dimension_semantics=("parallel",),
                vmem_limit_bytes=_limit(_need_a(tn)),
            ),
        )(x_c, w_p, g_p, b_p)
        return out_p if f_pad == dim_out else out_p[:, :dim_out]

    # ------------------------- Path B -------------------------
    # Feature tile that divides f_pad.
    tn_b = 128
    for cand in (512, 384, 256, 128):
        if f_pad % cand == 0:
            tn_b = cand
            break

    def _need_b1(tn_rows):
        return (_padded_bytes(tn_rows, dim_in, itemsize)
                + _padded_bytes(dim_in, tn_b, itemsize)
                + _padded_bytes(tn_rows, tn_b, 4)
                + 2 * _padded_bytes(1, tn_b, 4))

    tile_n = 8
    for cand in (2048, 1024, 512, 256, 128, 64, 32, 16, 8):
        if _need_b1(cand) <= budget:
            tile_n = cand
            break
    if max_tile_n is not None:
        tile_n = min(tile_n, max(8, max_tile_n))
    if tile_n >= n:
        tile_n = n                                   # single (full) batch tile
    n_tiles = _cdiv(n, tile_n)
    mask_tail = (n % tile_n) != 0

    # Pass 1: tiled matmul -> Y (HBM) + per-feature sum / sum-of-squares.
    k1 = functools.partial(_matmul_stats_kernel, n_rows=n, tile_n=tile_n,
                           mask_tail=mask_tail)
    y_p, s_p, q_p = pl.pallas_call(
        k1,
        out_shape=(
            jax.ShapeDtypeStruct((n, f_pad), jnp.float32),
            jax.ShapeDtypeStruct((1, f_pad), jnp.float32),
            jax.ShapeDtypeStruct((1, f_pad), jnp.float32),
        ),
        grid_spec=pltpu.PrefetchScalarGridSpec(
            num_scalar_prefetch=0,
            grid=(f_pad // tn_b, n_tiles),           # stats resident across nb
            in_specs=[
                pl.BlockSpec((tile_n, dim_in), lambda j, nb: (nb, 0)),
                pl.BlockSpec((dim_in, tn_b), lambda j, nb: (0, j)),
            ],
            out_specs=(
                pl.BlockSpec((tile_n, tn_b), lambda j, nb: (nb, j)),
                pl.BlockSpec((1, tn_b), lambda j, nb: (0, j)),
                pl.BlockSpec((1, tn_b), lambda j, nb: (0, j)),
            ),
        ),
        compiler_params=pltpu.CompilerParams(
            dimension_semantics=("parallel", "arbitrary"),
            vmem_limit_bytes=_limit(_need_b1(tile_n)),
        ),
    )(x_c, w_p)

    # Fold BN into a per-feature scale/shift (tiny (1, f_pad) vectors).
    inv_n = jnp.float32(1.0 / n)
    mean = s_p * inv_n
    var = jnp.maximum(q_p * inv_n - mean * mean, 0.0)   # biased variance
    scale = g_p * lax.rsqrt(var + BN_EPS)
    shift = b_p - mean * scale

    # Pass 2: elementwise normalize + tanh.
    need2 = 2 * _padded_bytes(tile_n, tn_b, 4) + 4 * _padded_bytes(1, tn_b, 4)
    out_p = pl.pallas_call(
        _bn_tanh_kernel,
        out_shape=jax.ShapeDtypeStruct((n, f_pad), jnp.float32),
        grid_spec=pltpu.PrefetchScalarGridSpec(
            num_scalar_prefetch=0,
            grid=(n_tiles, f_pad // tn_b),
            in_specs=[
                pl.BlockSpec((tile_n, tn_b), lambda nb, j: (nb, j)),
                pl.BlockSpec((1, tn_b), lambda nb, j: (0, j)),
                pl.BlockSpec((1, tn_b), lambda nb, j: (0, j)),
            ],
            out_specs=pl.BlockSpec((tile_n, tn_b), lambda nb, j: (nb, j)),
        ),
        compiler_params=pltpu.CompilerParams(
            dimension_semantics=("parallel", "parallel"),
            vmem_limit_bytes=_limit(need2),
        ),
    )(y_p, scale, shift)
    return out_p if f_pad == dim_out else out_p[:, :dim_out]


# ---------------------------------------------------------------------------
# Reference + test
# ---------------------------------------------------------------------------
def dnn_reference(x, w_t, b, gamma, beta):
    # PyTorch semantics: Linear WITH bias, training-mode BatchNorm1d (biased
    # variance, eps=1e-3), tanh.  The bias must cancel against the kernel's
    # bias-free path.
    y = jnp.dot(x, w_t, precision=lax.Precision.HIGHEST) + b
    mean = jnp.mean(y, axis=0, keepdims=True)
    var = jnp.mean((y - mean) ** 2, axis=0, keepdims=True)
    return jnp.tanh(gamma * (y - mean) / jnp.sqrt(var + BN_EPS) + beta)


def _make_case(key, batch, dim_in, dim_out):
    kx, kw, kb = jax.random.split(key, 3)
    x = jax.random.normal(kx, (batch, dim_in), dtype=jnp.float32)
    bound = 1.0 / jnp.sqrt(jnp.float32(dim_in))   # PyTorch-style init
    w = jax.random.uniform(kw, (dim_out, dim_in), minval=-bound, maxval=bound,
                           dtype=jnp.float32)
    b = jax.random.uniform(kb, (dim_out,), minval=-bound, maxval=bound,
                           dtype=jnp.float32)
    gamma = jnp.ones((dim_out,), dtype=jnp.float32)
    beta = jnp.zeros((dim_out,), dtype=jnp.float32)
    return x, w.T, b, gamma, beta


if __name__ == "__main__":
    key = jax.random.PRNGKey(0)
    k1, k2, k3 = jax.random.split(key, 3)

    # Case 1: the module's toy size (fused Path A, x resident, no x padding).
    x, w_t, b, gamma, beta = _make_case(k1, batch=8, dim_in=32, dim_out=32)
    params = prepare_params(w_t, gamma, beta)
    out = jax.block_until_ready(dnn_forward(x, params))
    ref = dnn_reference(x, w_t, b, gamma, beta)
    assert out.shape == (8, 32)
    assert jnp.allclose(out, ref, atol=1e-4, rtol=1e-4), "f32 mismatch (case 1)"

    # Case 1b: bf16 matmul operands (f32 accumulation + f32 BN/tanh epilogue).
    params_bf16 = prepare_params(w_t, gamma, beta, compute_dtype=jnp.bfloat16)
    out_bf = jax.block_until_ready(dnn_forward(x, params_bf16))
    assert jnp.allclose(out_bf, ref, atol=5e-2, rtol=5e-2), "bf16 mismatch"

    # Case 2: unaligned batch / feature sizes (full-dim blocks, output slice).
    x2, w_t2, b2, g2, be2 = _make_case(k2, batch=10, dim_in=48, dim_out=40)
    p2 = prepare_params(w_t2, g2, be2)
    out2 = jax.block_until_ready(dnn_forward(x2, p2))
    ref2 = dnn_reference(x2, w_t2, b2, g2, be2)
    assert out2.shape == (10, 40)
    assert jnp.allclose(out2, ref2, atol=1e-4, rtol=1e-4), "f32 mismatch (case 2)"

    # Case 3: batch-tiled two-pass path (large-N / v7x fallback), forced with a
    # small batch tile so the partial-tile masking is exercised.
    x3, w_t3, b3, g3, be3 = _make_case(k3, batch=200, dim_in=96, dim_out=150)
    p3 = prepare_params(w_t3, g3, be3)
    out3 = jax.block_until_ready(
        dnn_forward(x3, p3, force_two_pass=True, max_tile_n=64))
    ref3 = dnn_reference(x3, w_t3, b3, g3, be3)
    assert out3.shape == (200, 150)
    assert jnp.allclose(out3, ref3, atol=2e-4, rtol=2e-4), "two-pass mismatch"

    # TODO(synk): BatchNorm1d running_mean/running_var updates (momentum=0.01)
    # are training-side buffer mutations, not part of the forward output.
    print("KERNEL_OK")
</pallas_src>

<mosaic_0001>
module attributes {stable_mosaic.version = 11 : i64} {
  func.func @_fused_kernel(%arg0: i32, %arg1: memref<8x32xf32, #tpu.memory_space<vmem>>, %arg2: memref<32x128xf32, #tpu.memory_space<vmem>>, %arg3: memref<1x128xf32, #tpu.memory_space<vmem>>, %arg4: memref<1x128xf32, #tpu.memory_space<vmem>>, %arg5: memref<8x128xf32, #tpu.memory_space<vmem>>) attributes {dimension_semantics = [#tpu.dimension_semantics<parallel>], iteration_bounds = array<i64: 1>, scalar_prefetch = 0 : i64, scratch_operands = 0 : i64, tpu.core_type = #tpu.core_type<tc>, window_params = [{pipeline_mode = #tpu.pipeline_mode<synchronous>, transform_indices = @transform_0, window_bounds = array<i64: 8, 32>}, {transform_indices = @transform_1, window_bounds = array<i64: 32, 128>}, {transform_indices = @transform_2, window_bounds = array<i64: 1, 128>}, {transform_indices = @transform_3, window_bounds = array<i64: 1, 128>}, {transform_indices = @transform_4, window_bounds = array<i64: 8, 128>}]} {
    %c0 = arith.constant 0 : index
    %c0_0 = arith.constant 0 : index
    %0 = vector.load %arg1[%c0, %c0_0] : memref<8x32xf32, #tpu.memory_space<vmem>>, vector<8x32xf32>
    %c0_1 = arith.constant 0 : index
    %c0_2 = arith.constant 0 : index
    %1 = vector.load %arg2[%c0_1, %c0_2] : memref<32x128xf32, #tpu.memory_space<vmem>>, vector<32x128xf32>
    %cst = arith.constant dense<0.000000e+00> : vector<8x128xf32>
    %2 = tpu.matmul %0, %1, %cst {dimension_numbers = #tpu.dot_dimension_numbers<[1], [0], [0], [1], [0, 0, 1, 1], [], []>} : vector<8x32xf32>, vector<32x128xf32>, vector<8x128xf32> -> vector<8x128xf32>
    %cst_3 = arith.constant dense<0.000000e+00> : vector<128xf32>
    %3 = vector.multi_reduction <add>, %2, %cst_3 [0] : vector<8x128xf32> to vector<128xf32>
    %4 = vector.shape_cast %3 : vector<128xf32> to vector<1x128xf32>
    %cst_4 = arith.constant 1.250000e-01 : f32
    %5 = vector.broadcast %cst_4 : f32 to vector<1x128xf32>
    %6 = arith.mulf %4, %5 : vector<1x128xf32>
    %7 = vector.broadcast %6 : vector<1x128xf32> to vector<8x128xf32>
    %8 = arith.subf %2, %7 : vector<8x128xf32>
    %9 = arith.mulf %8, %8 : vector<8x128xf32>
    %cst_5 = arith.constant dense<0.000000e+00> : vector<128xf32>
    %10 = vector.multi_reduction <add>, %9, %cst_5 [0] : vector<8x128xf32> to vector<128xf32>
    %11 = vector.shape_cast %10 : vector<128xf32> to vector<1x128xf32>
    %cst_6 = arith.constant 1.250000e-01 : f32
    %12 = vector.broadcast %cst_6 : f32 to vector<1x128xf32>
    %13 = arith.mulf %11, %12 : vector<1x128xf32>
    %c0_7 = arith.constant 0 : index
    %c0_8 = arith.constant 0 : index
    %14 = vector.load %arg3[%c0_7, %c0_8] : memref<1x128xf32, #tpu.memory_space<vmem>>, vector<1x128xf32>
    %cst_9 = arith.constant 1.000000e-03 : f32
    %15 = vector.broadcast %cst_9 : f32 to vector<1x128xf32>
    %16 = arith.addf %13, %15 : vector<1x128xf32>
    %17 = math.rsqrt %16 : vector<1x128xf32>
    %18 = arith.mulf %14, %17 : vector<1x128xf32>
    %19 = vector.broadcast %18 : vector<1x128xf32> to vector<8x128xf32>
    %20 = arith.mulf %8, %19 : vector<8x128xf32>
    %c0_10 = arith.constant 0 : index
    %c0_11 = arith.constant 0 : index
    %21 = vector.load %arg4[%c0_10, %c0_11] : memref<1x128xf32, #tpu.memory_space<vmem>>, vector<1x128xf32>
    %22 = vector.broadcast %21 : vector<1x128xf32> to vector<8x128xf32>
    %23 = arith.addf %20, %22 : vector<8x128xf32>
    %24 = math.tanh %23 : vector<8x128xf32>
    %c0_12 = arith.constant 0 : index
    %c0_13 = arith.constant 0 : index
    %25 = vector.load %arg5[%c0_12, %c0_13] : memref<8x128xf32, #tpu.memory_space<vmem>>, vector<8x128xf32>
    tpu.vector_store %arg5[%c0_12, %c0_13], %24 {strides = array<i32>} : memref<8x128xf32, #tpu.memory_space<vmem>>, vector<8x128xf32>,
    return
  }
  func.func @transform_0(%arg0: i32) -> (i32, i32) {
    %c0_i32 = arith.constant 0 : i32
    %c0_i32_0 = arith.constant 0 : i32
    %c0_i32_1 = arith.constant 0 : i32
    return %c0_i32, %c0_i32_0 : i32, i32
  }
  func.func @transform_1(%arg0: i32) -> (i32, i32) {
    %c0_i32 = arith.constant 0 : i32
    %c0_i32_0 = arith.constant 0 : i32
    return %c0_i32, %arg0 : i32, i32
  }
  func.func @transform_2(%arg0: i32) -> (i32, i32) {
    %c0_i32 = arith.constant 0 : i32
    %c0_i32_0 = arith.constant 0 : i32
    return %c0_i32, %arg0 : i32, i32
  }
  func.func @transform_3(%arg0: i32) -> (i32, i32) {
    %c0_i32 = arith.constant 0 : i32
    %c0_i32_0 = arith.constant 0 : i32
    return %c0_i32, %arg0 : i32, i32
  }
  func.func @transform_4(%arg0: i32) -> (i32, i32) {
    %c0_i32 = arith.constant 0 : i32
    %c0_i32_0 = arith.constant 0 : i32
    return %c0_i32, %arg0 : i32, i32
  }
}

</mosaic_0001>

<bundles_post_ra>
// kernel: tpu_custom_call.1
= control target key start
LH: loop header
LB: loop body
LE: loop exit
PB: predicated region body
PF: predicated region fallthrough
CT: control target
= control target key end

     0   :  { %9 = vsyncpa [#allocation3], 0  ;;  %s366_s0 = inlined_call_operand.hbm [shape: f32[8,32], index: 0, kind: input, shape index: {}]   ;;  %s367_s1 = inlined_call_operand.hbm [shape: f32[32,128], index: 1, kind: input, shape index: {}]   ;;  %s368_s2 = inlined_call_operand.vmem [shape: f32[1,128], index: 2, kind: input, shape index: {}]   ;;  %s369_s3 = inlined_call_operand.vmem [shape: f32[1,128], index: 3, kind: input, shape index: {}]   ;;  %s370_s4 = inlined_call_operand.hbm [shape: f32[8,128], index: 4, kind: output, shape index: {}]  }
   0x1   :  { %10 = vsyncpa [#allocation6], 0 }
   0x2   :  { %11 = vsyncpa [#allocation4], 0  ;;  %s284_s15 = smov [#allocation2]   ;;  %s285_s17 = smov [#allocation5]  }
   0x3   :  { %s18_s16 = sshll.u32 %s284_s15, 4  ;;  %s27_s18 = sshll.u32 %s285_s17, 4  ;;  %s19_s16 = int_to_ptr.vmem [resolvable:$true] %s18_s16  ;;  %s317_s18 = int_to_ptr.vmem [resolvable:$true] %s27_s18 }
   0x4   :  { %s212_s21 = scalar_lea.hbm %s366_s0, 128 }
   0x5   :  { %p213_p0 = scmp.ne.s32.totalorder %s366_s0, %s212_s21  ;;  %p216_p1 = scmp.lt.u32.totalorder %s212_s21, %s366_s0 }
   0x7   :  { %p218_p2 = pnand %p216_p1, %p213_p0 }
   0x9   :  { %221 = shalt.err (!%p218_p2)
}
   0xa   :  { %s222_s26 = scalar_lea.vmem %s19_s16, 128  ;;  %p227_p4 = scmp.lt.s32.totalorder %s19_s16, %s19_s16 }
   0xb   :  { %p223_p3 = scmp.ne.s32.totalorder %s19_s16, %s222_s26  ;;  %p228_p5 = scmp.lt.s32.totalorder %s222_s26, %s222_s26 }
   0xd   :  { %p229_p6 = por %p228_p5, %p227_p4 }
   0xf   :  { %p230_p7 = pnand %p229_p6, %p223_p3 }
  0x11   :  { %233 = shalt.err (!%p230_p7)
}
  0x12   :  { %21 = dma.hbm_to_vmem [thread:$0]  %s366_s0, 128, %s19_s16, [#allocation3]  }
  0x13   :  { %s234_s5 = scalar_lea.hbm %s367_s1, 512 }
  0x14   :  { %p235_p8 = scmp.ne.s32.totalorder %s367_s1, %s234_s5  ;;  %p238_p9 = scmp.lt.u32.totalorder %s234_s5, %s367_s1 }
  0x16   :  { %p240_p10 = pnand %p238_p9, %p235_p8 }
  0x18   :  { %243 = shalt.err (!%p240_p10)
}
  0x19   :  { %s244_s10 = scalar_lea.vmem %s317_s18, 512  ;;  %p249_p12 = scmp.lt.s32.totalorder %s317_s18, %s317_s18 }
  0x1a   :  { %p245_p11 = scmp.ne.s32.totalorder %s317_s18, %s244_s10  ;;  %p250_p13 = scmp.lt.s32.totalorder %s244_s10, %s244_s10 }
  0x1c   :  { %p251_p0 = por %p250_p13, %p249_p12 }
  0x1e   :  { %p252_p1 = pnand %p251_p0, %p245_p11 }
  0x20   :  { %255 = shalt.err (!%p252_p1)
}
  0x21   :  { %s286_s0 = smov 128   ;;  %s287_s11 = smov 8  }
  0x22   :  { %33 = dma.hbm_to_vmem [thread:$0]  %s367_s1, 512, %s317_s18, [#allocation6], %s286_s0, %s286_s0, %s287_s11  }
  0x23   :  { %278 = dma.done.wait [#allocation3], 128  }
  0x24   :  { %279 = vsyncadd [#allocation3], 4294967168 }
  0x25   :  { %280 = dma.done.wait [#allocation6], 512  }
  0x26   :  { %281 = vsyncadd [#allocation6], 4294966784  ;;  %v288_v0 = vmov 0.0|0.0   ;;  %vm289_vm0 = vmmov 0   ;;  %v290_v1 = vmov 0.0   ;;  %v45_v2 = vld [vmem:[#allocation5] sm:$0xff]  ;;  %v144_v28 = vlaneseq }
  0x27   :  { %194 = vmatprep.subr.bf16.mxu0 %v288_v0  ;;  %191 = vmatprep.mubr.msk.f32.mxu0 %vm289_vm0, %v290_v1  ;;  %v46_v3 = vld [vmem:[#allocation5 + $0x8] sm:$0xff]  ;;  %v47_v4 = vld [vmem:[#allocation5 + $0x10] sm:$0xff]  ;;  %v48_v6 = vld [vmem:[#allocation5 + $0x18] sm:$0xff]  ;;  %vm49_vm1 = vcmask 261120   ;;  %s291_s17 = smov [#allocation7]  }
  0x28   :  { %v195_v5 = vpack.c.bf16 %v46_v3, %v45_v2  ;;  %v198_v7 = vpack.c.bf16 %v48_v6, %v47_v4  ;;  %v44_v8 = vld [vmem:[#allocation2] sm:$0xff]  ;;  %v145_v29 = vshrl.u32 %v144_v28, 7  ;;  %s166_s18 = sshll.u32 %s291_s17, 4  ;;  %s167_s18 = int_to_ptr.vmem [resolvable:$true] %s166_s18 }
  0x29   :  { %v139_v30 = vld [vmem:[%s368_s2] sm:$0x1]  ;;  %s256_s19 = scalar_lea.vmem %s167_s18, 128  ;;  %p261_p3 = scmp.lt.s32.totalorder %s167_s18, %s167_s18 }
  0x2a   :  { %196 = vmatpush3.bf16.msra.mxu0 %v195_v5  ;;  %v146_v31 = vsub.s32 0, %v145_v29  ;;  %v177_v35 = vld [vmem:[%s369_s3] ss:$0 sm:$0xff]  ;;  %p257_p2 = scmp.ne.s32.totalorder %s167_s18, %s256_s19  ;;  %p262_p4 = scmp.lt.s32.totalorder %s256_s19, %s256_s19 }
  0x2b   :  { %197 = vmatprep.subr.bf16.mxu0 %v288_v0 }
  0x2c   :  { %p263_p5 = por %p262_p4, %p261_p3 }
  0x2e   :  { %199 = vmatpush3.bf16.msra.mxu0 %v198_v7  ;;  %p264_p6 = pnand %p263_p5, %p257_p2 }
  0x31   :  { %192 = vmatmul.mubr.msk.f32.vlgmr.msra.gmra.mrb[0].mxu0 %vm49_vm1, %v44_v8 }
 0x104   :  { %v119_v9 = vpop.f32.mrb[0].mxu0 }
 0x105   :  { %v123_v10 = vrot.slane %v119_v9, 4  ;;  %v193_v11 = vpop.f32.mrb[1].mxu0 }
 0x107   :  { %v124_v12 = vadd.f32 %v123_v10, %v119_v9 }
 0x109   :  { %v125_v13 = vrot.slane %v124_v12, 2 }
 0x10b   :  { %v126_v14 = vadd.f32 %v125_v13, %v124_v12 }
 0x10d   :  { %v127_v15 = vrot.slane %v126_v14, 1 }
 0x10f   :  { %v128_v16 = vadd.f32 %v127_v15, %v126_v14 }
 0x111   :  { %v129_v17 = vmul.f32 0.125, %v128_v16 }
 0x113   :  { %v130_v18 = vsub.f32 %v119_v9, %v129_v17 }
 0x115   :  { %v131_v19 = vmul.f32 %v130_v18, %v130_v18 }
 0x117   :  { %v132_v20 = vrot.slane %v131_v19, 4 }
 0x119   :  { %v133_v21 = vadd.f32 %v132_v20, %v131_v19 }
 0x11b   :  { %v134_v22 = vrot.slane %v133_v21, 2 }
 0x11d   :  { %v135_v23 = vadd.f32 %v134_v22, %v133_v21 }
 0x11f   :  { %v136_v24 = vrot.slane %v135_v23, 1 }
 0x121   :  { %v137_v25 = vadd.f32 %v136_v24, %v135_v23 }
 0x123   :  { %v138_v26 = vmul.f32 0.125, %v137_v25 }
 0x125   :  { %v140_v27 = vadd.f32 0.001, %v138_v26 }
 0x127   :  { %208 = vrsqrt.f32 %v140_v27 }
 0x131   :  { %v209_v32 = vpop.eup %208 }
 0x132   :  { %v142_v33 = vmul.f32 %v209_v32, %v139_v30 }
 0x134   :  { %v147_v34 = vrot.slane %v142_v33, %v146_v31 }
 0x136   :  { %v149_v36 = vmul.f32 %v147_v34, %v130_v18 }
 0x138   :  { %v157_v37 = vadd.f32 %v177_v35, %v149_v36 }
 0x13a   :  { %210 = vtanh.f32 %v157_v37 }
 0x144   :  { %v211_v38 = vpop.eup %210 }
 0x145   :  { %159 = vst [vmem:[#allocation7] sm:$0xff] %v211_v38 }
 0x146   :  { %267 = shalt.err (!%p264_p6)
}
 0x147   :  { %s268_s21 = scalar_lea.hbm %s370_s4, 128 }
 0x148   :  { %p269_p7 = scmp.ne.s32.totalorder %s370_s4, %s268_s21  ;;  %p272_p8 = scmp.lt.u32.totalorder %s268_s21, %s370_s4 }
 0x14a   :  { %p274_p9 = pnand %p272_p8, %p269_p7 }
 0x14c   :  { %277 = shalt.err (!%p274_p9)
}
 0x14d   :  { %169 = dma.vmem_to_hbm [thread:$0]  %s167_s18, 128, %s370_s4, [#allocation4]  }
 0x14e   :  { %282 = dma.done.wait [#allocation4], 128  }
 0x14f   :  { %283 = vsyncadd [#allocation4], 4294967168 }
 0x150   :  { %173 = vsyncpa [#allocation3], 1 }
 0x151   :  { %174 = vsyncpa [#allocation6], 1 }
 0x152   :  { %175 = vsyncpa [#allocation4], 1 }

</bundles_post_ra>
